<compile_context>
chip_gen: v6e
topology: v6e:2x2x1
jax: 0.10.0
libtpu: 0.0.40
codegen_flags: <defaults>
</compile_context>

<pallas_src>
import math

import jax
import jax.numpy as jnp
from jax.experimental import pallas as pl
from jax.experimental.pallas import tpu as pltpu


def _round_up(n: int, m: int) -> int:
    return ((n + m - 1) // m) * m


def mlp_kernel(x_ref, w1_ref, b1_ref, w2_ref, b2_ref, w3_ref, b3_ref, o_ref):
    # In-kernel cast to the compute dtype (no extra HBM pass in the wrapper).
    x = x_ref[...].astype(w1_ref.dtype)

    # Layer 1: Linear + ReLU (MXU, f32 accumulation; bias row broadcasts over batch).
    h1 = jnp.dot(x, w1_ref[...], preferred_element_type=jnp.float32)
    h1 = jnp.maximum(h1 + b1_ref[...], 0.0)

    # Layer 2: Linear + ReLU (MXU, f32 accumulation).
    h2 = jnp.dot(h1.astype(w2_ref.dtype), w2_ref[...],
                 preferred_element_type=jnp.float32)
    h2 = jnp.maximum(h2 + b2_ref[...], 0.0)

    # Layer 3: (H2 -> 1). An N=1 MXU matmul wastes the systolic array; use a
    # VPU multiply + lane reduction (f32) instead. w3_ref is the (1, H2) row.
    out = jnp.sum(h2 * w3_ref[...], axis=-1)  # (TB,)

    # Lane-dense store: batch lives on the lanes of the (1, TB) output block.
    # (The torch Squeeze(-1) falls out of this layout for free.)
    o_ref[...] = (out[None, :] + b3_ref[...]).astype(o_ref.dtype)


def mlp_forward(x, params, *, squeeze_output=True, block_batch=4096,
                compute_dtype=jnp.bfloat16):
    """Fused MLP forward.

    x:      (B, D_in)   — pass bf16 from the producer for the full HBM-BW win.
    params: [(W1, b1), (W2, b2), (W3, b3)], W shape (in, out), b shape (out,)
    Returns (B,) if squeeze_output else (B, 1). Output is always float32.
    compute_dtype=jnp.float32 matches the PyTorch module bit-for-bit semantics;
    the default bf16 keeps f32 accumulation/bias/ReLU (small precision loss).
    """
    (w1, b1), (w2, b2), (w3, b3) = params
    B, d_in = x.shape
    h1_dim = w1.shape[1]
    h2_dim = w2.shape[1]
    d_out = w3.shape[1]
    assert d_out == 1, "squeeze_output requires last dim == 1"

    # Batch tile: multiple of 128 (lane-dense output), as large as block_batch,
    # but small enough to keep >= 2 grid steps when B allows it (v7x dual-TC).
    tb = max(128, min(_round_up(block_batch, 128),
                      _round_up(pl.cdiv(B, 2), 128)))
    grid = (pl.cdiv(B, tb),)   # ragged last block handled by Pallas masking

    # Weights are tiny and VMEM-resident; cast them once in the wrapper.
    w1c = w1.astype(compute_dtype)
    w2c = w2.astype(compute_dtype)
    b1r = b1.reshape(1, h1_dim).astype(jnp.float32)
    b2r = b2.reshape(1, h2_dim).astype(jnp.float32)
    w3r = w3.reshape(1, h2_dim).astype(jnp.float32)   # weight row for lane reduce
    b3r = b3.reshape(1, 1).astype(jnp.float32)

    flops = 2 * B * (d_in * h1_dim + h1_dim * h2_dim + h2_dim)
    bytes_accessed = (B * d_in * x.dtype.itemsize + B * 4
                      + w1c.size * w1c.dtype.itemsize
                      + w2c.size * w2c.dtype.itemsize
                      + (h1_dim + h2_dim + h2_dim + 1) * 4)
    cost = pl.CostEstimate(flops=int(flops), transcendentals=0,
                           bytes_accessed=int(bytes_accessed))

    out = pl.pallas_call(
        mlp_kernel,
        out_shape=jax.ShapeDtypeStruct((1, B), jnp.float32),
        grid=grid,
        in_specs=[
            # x: streamed over batch tiles (double-buffered HBM->VMEM pipeline).
            pl.BlockSpec((tb, d_in), lambda i: (i, 0)),
            # Weights / biases: full blocks, constant index -> VMEM-resident.
            pl.BlockSpec((d_in, h1_dim), lambda i: (0, 0)),
            pl.BlockSpec((1, h1_dim), lambda i: (0, 0)),
            pl.BlockSpec((h1_dim, h2_dim), lambda i: (0, 0)),
            pl.BlockSpec((1, h2_dim), lambda i: (0, 0)),
            pl.BlockSpec((1, h2_dim), lambda i: (0, 0)),
            pl.BlockSpec((1, 1), lambda i: (0, 0)),
        ],
        # Lane-dense output: (1, TB) block with batch on lanes; ragged tail masked.
        out_specs=pl.BlockSpec((1, tb), lambda i: (0, i)),
        compiler_params=pltpu.CompilerParams(
            dimension_semantics=("parallel",),
            vmem_limit_bytes=32 * 1024 * 1024,
        ),
        cost_estimate=cost,
    )(x, w1c, b1r, w2c, b2r, w3r, b3r)

    row = out[0]                          # (B,) — squeeze is free in this layout
    return row if squeeze_output else row[:, None]


def init_linear(key, d_in, d_out):
    """Deterministic init matching nn.Linear's default U(-1/sqrt(in), 1/sqrt(in)).
    Returns W with shape (in, out) and b with shape (out,)."""
    kw, kb = jax.random.split(key)
    bound = 1.0 / math.sqrt(d_in)
    w = jax.random.uniform(kw, (d_in, d_out), jnp.float32, -bound, bound)
    b = jax.random.uniform(kb, (d_out,), jnp.float32, -bound, bound)
    return w, b


if __name__ == "__main__":
    # MLP(dims=[16, 32, 32, 1], activation_fn=nn.ReLU, squeeze_output=True)
    # TODO(synk): dropout / output_activation_fn are not used by this configuration.
    dims = [16, 32, 32, 1]

    key = jax.random.PRNGKey(0)
    kx, k1, k2, k3, kx2, kx3 = jax.random.split(key, 6)

    params = [
        init_linear(k1, dims[0], dims[1]),
        init_linear(k2, dims[1], dims[2]),
        init_linear(k3, dims[2], dims[3]),
    ]

    def ref_forward(xin):
        h = xin
        for i, (w, b) in enumerate(params):
            h = h @ w + b
            if i < len(params) - 1:
                h = jnp.maximum(h, 0.0)
        return jnp.squeeze(h, axis=-1)

    # 1) Small batch, f32 compute: exact-semantics check vs. the reference.
    x_small = jax.random.normal(kx, (8, dims[0]), jnp.float32)
    y_small = jax.block_until_ready(
        mlp_forward(x_small, params, compute_dtype=jnp.float32))
    assert y_small.shape == (8,), y_small.shape
    assert jnp.allclose(y_small, ref_forward(x_small), atol=1e-4, rtol=1e-4)

    # 2) Non-divisible batch, default bf16 compute: exercises ragged last block
    #    (no wrapper-side padding) and the 2-step grid. Looser tolerance for bf16.
    x_rag = jax.random.normal(kx2, (333, dims[0]), jnp.float32)
    y_rag = jax.block_until_ready(mlp_forward(x_rag, params))
    assert y_rag.shape == (333,), y_rag.shape
    assert jnp.allclose(y_rag, ref_forward(x_rag), atol=5e-2, rtol=5e-2)

    # 3) Larger batch, default bf16 compute: even 2-way grid split, resident weights.
    x_big = jax.random.normal(kx3, (1280, dims[0]), jnp.float32)
    y_big = jax.block_until_ready(mlp_forward(x_big, params))
    assert y_big.shape == (1280,), y_big.shape
    assert jnp.allclose(y_big, ref_forward(x_big), atol=5e-2, rtol=5e-2)

    print("KERNEL_OK")
</pallas_src>

<mosaic_0001>
module attributes {stable_mosaic.version = 11 : i64} {
  func.func @mlp_kernel(%arg0: i32, %arg1: memref<128x16xf32, #tpu.memory_space<vmem>>, %arg2: memref<16x32xf32, #tpu.memory_space<vmem>>, %arg3: memref<1x32xf32, #tpu.memory_space<vmem>>, %arg4: memref<32x32xf32, #tpu.memory_space<vmem>>, %arg5: memref<1x32xf32, #tpu.memory_space<vmem>>, %arg6: memref<1x32xf32, #tpu.memory_space<vmem>>, %arg7: memref<1x1xf32, #tpu.memory_space<vmem>>, %arg8: memref<1x128xf32, #tpu.memory_space<vmem>>) attributes {dimension_semantics = [#tpu.dimension_semantics<parallel>], iteration_bounds = array<i64: 1>, scalar_prefetch = 0 : i64, scratch_operands = 0 : i64, tpu.core_type = #tpu.core_type<tc>, window_params = [{transform_indices = @transform_0, window_bounds = array<i64: 128, 16>}, {pipeline_mode = #tpu.pipeline_mode<synchronous>, transform_indices = @transform_1, window_bounds = array<i64: 16, 32>}, {pipeline_mode = #tpu.pipeline_mode<synchronous>, transform_indices = @transform_2, window_bounds = array<i64: 1, 32>}, {pipeline_mode = #tpu.pipeline_mode<synchronous>, transform_indices = @transform_3, window_bounds = array<i64: 32, 32>}, {pipeline_mode = #tpu.pipeline_mode<synchronous>, transform_indices = @transform_4, window_bounds = array<i64: 1, 32>}, {pipeline_mode = #tpu.pipeline_mode<synchronous>, transform_indices = @transform_5, window_bounds = array<i64: 1, 32>}, {pipeline_mode = #tpu.pipeline_mode<synchronous>, transform_indices = @transform_6, window_bounds = array<i64: 1, 1>}, {transform_indices = @transform_7, window_bounds = array<i64: 1, 128>}]} {
    %c0 = arith.constant 0 : index
    %c0_0 = arith.constant 0 : index
    %0 = vector.load %arg1[%c0, %c0_0] : memref<128x16xf32, #tpu.memory_space<vmem>>, vector<128x16xf32>
    %c0_1 = arith.constant 0 : index
    %c0_2 = arith.constant 0 : index
    %1 = vector.load %arg2[%c0_1, %c0_2] : memref<16x32xf32, #tpu.memory_space<vmem>>, vector<16x32xf32>
    %cst = arith.constant dense<0.000000e+00> : vector<128x32xf32>
    %2 = tpu.matmul %0, %1, %cst {dimension_numbers = #tpu.dot_dimension_numbers<[1], [0], [0], [1], [0, 0, 1, 1], [], []>} : vector<128x16xf32>, vector<16x32xf32>, vector<128x32xf32> -> vector<128x32xf32>
    %c0_3 = arith.constant 0 : index
    %c0_4 = arith.constant 0 : index
    %3 = vector.load %arg3[%c0_3, %c0_4] : memref<1x32xf32, #tpu.memory_space<vmem>>, vector<1x32xf32>
    %4 = vector.broadcast %3 : vector<1x32xf32> to vector<128x32xf32>
    %5 = arith.addf %2, %4 : vector<128x32xf32>
    %cst_5 = arith.constant 0.000000e+00 : f32
    %6 = vector.broadcast %cst_5 : f32 to vector<128x32xf32>
    %7 = arith.maximumf %5, %6 : vector<128x32xf32>
    %c0_6 = arith.constant 0 : index
    %c0_7 = arith.constant 0 : index
    %8 = vector.load %arg4[%c0_6, %c0_7] : memref<32x32xf32, #tpu.memory_space<vmem>>, vector<32x32xf32>
    %cst_8 = arith.constant dense<0.000000e+00> : vector<128x32xf32>
    %9 = tpu.matmul %7, %8, %cst_8 {dimension_numbers = #tpu.dot_dimension_numbers<[1], [0], [0], [1], [0, 0, 1, 1], [], []>} : vector<128x32xf32>, vector<32x32xf32>, vector<128x32xf32> -> vector<128x32xf32>
    %c0_9 = arith.constant 0 : index
    %c0_10 = arith.constant 0 : index
    %10 = vector.load %arg5[%c0_9, %c0_10] : memref<1x32xf32, #tpu.memory_space<vmem>>, vector<1x32xf32>
    %11 = vector.broadcast %10 : vector<1x32xf32> to vector<128x32xf32>
    %12 = arith.addf %9, %11 : vector<128x32xf32>
    %cst_11 = arith.constant 0.000000e+00 : f32
    %13 = vector.broadcast %cst_11 : f32 to vector<128x32xf32>
    %14 = arith.maximumf %12, %13 : vector<128x32xf32>
    %c0_12 = arith.constant 0 : index
    %c0_13 = arith.constant 0 : index
    %15 = vector.load %arg6[%c0_12, %c0_13] : memref<1x32xf32, #tpu.memory_space<vmem>>, vector<1x32xf32>
    %16 = vector.broadcast %15 : vector<1x32xf32> to vector<128x32xf32>
    %17 = arith.mulf %14, %16 : vector<128x32xf32>
    %cst_14 = arith.constant dense<0.000000e+00> : vector<128xf32>
    %18 = vector.multi_reduction <add>, %17, %cst_14 [1] : vector<128x32xf32> to vector<128xf32>
    %19 = vector.shape_cast %18 : vector<128xf32> to vector<1x128xf32>
    %c0_15 = arith.constant 0 : index
    %c0_16 = arith.constant 0 : index
    %20 = vector.load %arg7[%c0_15, %c0_16] : memref<1x1xf32, #tpu.memory_space<vmem>>, vector<1x1xf32>
    %21 = vector.broadcast %20 : vector<1x1xf32> to vector<1x128xf32>
    %22 = arith.addf %19, %21 : vector<1x128xf32>
    %c0_17 = arith.constant 0 : index
    %c0_18 = arith.constant 0 : index
    %23 = vector.load %arg8[%c0_17, %c0_18] : memref<1x128xf32, #tpu.memory_space<vmem>>, vector<1x128xf32>
    tpu.vector_store %arg8[%c0_17, %c0_18], %22 {strides = array<i32>} : memref<1x128xf32, #tpu.memory_space<vmem>>, vector<1x128xf32>,
    return
  }
  func.func @transform_0(%arg0: i32) -> (i32, i32) {
    %c0_i32 = arith.constant 0 : i32
    %c0_i32_0 = arith.constant 0 : i32
    return %arg0, %c0_i32 : i32, i32
  }
  func.func @transform_1(%arg0: i32) -> (i32, i32) {
    %c0_i32 = arith.constant 0 : i32
    %c0_i32_0 = arith.constant 0 : i32
    %c0_i32_1 = arith.constant 0 : i32
    return %c0_i32, %c0_i32_0 : i32, i32
  }
  func.func @transform_2(%arg0: i32) -> (i32, i32) {
    %c0_i32 = arith.constant 0 : i32
    %c0_i32_0 = arith.constant 0 : i32
    %c0_i32_1 = arith.constant 0 : i32
    return %c0_i32, %c0_i32_0 : i32, i32
  }
  func.func @transform_3(%arg0: i32) -> (i32, i32) {
    %c0_i32 = arith.constant 0 : i32
    %c0_i32_0 = arith.constant 0 : i32
    %c0_i32_1 = arith.constant 0 : i32
    return %c0_i32, %c0_i32_0 : i32, i32
  }
  func.func @transform_4(%arg0: i32) -> (i32, i32) {
    %c0_i32 = arith.constant 0 : i32
    %c0_i32_0 = arith.constant 0 : i32
    %c0_i32_1 = arith.constant 0 : i32
    return %c0_i32, %c0_i32_0 : i32, i32
  }
  func.func @transform_5(%arg0: i32) -> (i32, i32) {
    %c0_i32 = arith.constant 0 : i32
    %c0_i32_0 = arith.constant 0 : i32
    %c0_i32_1 = arith.constant 0 : i32
    return %c0_i32, %c0_i32_0 : i32, i32
  }
  func.func @transform_6(%arg0: i32) -> (i32, i32) {
    %c0_i32 = arith.constant 0 : i32
    %c0_i32_0 = arith.constant 0 : i32
    %c0_i32_1 = arith.constant 0 : i32
    return %c0_i32, %c0_i32_0 : i32, i32
  }
  func.func @transform_7(%arg0: i32) -> (i32, i32) {
    %c0_i32 = arith.constant 0 : i32
    %c0_i32_0 = arith.constant 0 : i32
    return %c0_i32, %arg0 : i32, i32
  }
}

</mosaic_0001>

<bundles_post_ra>
// kernel: tpu_custom_call.1
= control target key start
LH: loop header
LB: loop body
LE: loop exit
PB: predicated region body
PF: predicated region fallthrough
CT: control target
= control target key end

     0   :  { %s1208_s0 = inlined_call_operand.hbm [shape: f32[8,16], index: 0, kind: input, shape index: {}]   ;;  %s1209_s1 = inlined_call_operand.hbm [shape: f32[16,32], index: 1, kind: input, shape index: {}]   ;;  %s1210_s2 = inlined_call_operand.vmem [shape: f32[1,32], index: 2, kind: input, shape index: {}]   ;;  %s1211_s3 = inlined_call_operand.hbm [shape: f32[32,32], index: 3, kind: input, shape index: {}]   ;;  %s1212_s4 = inlined_call_operand.vmem [shape: f32[1,32], index: 4, kind: input, shape index: {}]   ;;  %s1213_s5 = inlined_call_operand.vmem [shape: f32[1,32], index: 5, kind: input, shape index: {}]   ;;  %s1214_s6 = inlined_call_operand.<no memory space> [shape: f32[1,1], index: 6, kind: input, shape index: {}]   ;;  %s1215_s7 = inlined_call_operand.hbm [shape: f32[1,8], index: 7, kind: output, shape index: {}]  }
   0x1   :  { %v12_v0 = vstv %s1214_s6 }
   0x2   :  { %13 = vst [vmem:[#allocation2] sm:$0x1] %v12_v0 }
   0x3   :  { %14 = vsyncpa [#allocation4], 0 }
   0x4   :  { %15 = vsyncpa [#allocation7], 0 }
   0x5   :  { %16 = vsyncpa [#allocation5], 0 }
   0x6   :  { %21 = vsyncadd [#allocation4], 1920  ;;  %s996_s26 = smov [#allocation6]   ;;  %s997_s28 = smov [#allocation3]  }
   0x7   :  { %s34_s27 = sshll.u32 %s996_s26, 4  ;;  %s22_s29 = sshll.u32 %s997_s28, 4  ;;  %s35_s27 = int_to_ptr.vmem [resolvable:$true] %s34_s27  ;;  %s23_s29 = int_to_ptr.vmem [resolvable:$true] %s22_s29 }
   0x8   :  { %s918_s30 = scalar_lea.vmem %s35_s27, 256  ;;  %p923_p1 = scmp.lt.s32.totalorder %s35_s27, %s35_s27 }
   0x9   :  { %p919_p0 = scmp.ne.s32.totalorder %s35_s27, %s918_s30  ;;  %p924_p2 = scmp.lt.s32.totalorder %s918_s30, %s918_s30 }
   0xb   :  { %p925_p3 = por %p924_p2, %p923_p1 }
   0xd   :  { %p926_p4 = pnand %p925_p3, %p919_p0 }
   0xf   :  { %929 = shalt.err (!%p926_p4)
}
  0x10   :  { %s998_s8 = smov 128   ;;  %s999_s6 = smov 8  }
  0x11   :  { %40 = dma.hbm_to_vmem [thread:$0]  %s1209_s1, 256, %s35_s27, [#allocation7], %s998_s8, %s998_s8, %s999_s6  }
  0x12   :  { %s938_s11 = scalar_lea.vmem %s23_s29, 128  ;;  %s942_s12 = scalar_lea.vmem %s23_s29, 2048 }
  0x13   :  { %p939_p5 = scmp.ne.s32.totalorder %s23_s29, %s938_s11  ;;  %p943_p6 = scmp.lt.s32.totalorder %s23_s29, %s23_s29 }
  0x14   :  { %p944_p7 = scmp.lt.s32.totalorder %s942_s12, %s938_s11 }
  0x16   :  { %p945_p8 = por %p944_p7, %p943_p6 }
  0x18   :  { %p946_p9 = pnand %p945_p8, %p939_p5 }
  0x1a   :  { %949 = shalt.err (!%p946_p9)
}
  0x1b   :  { %28 = dma.hbm_to_vmem [thread:$0]  %s1208_s0, 128, %s23_s29, [#allocation4], %s998_s8, %s998_s8, %s999_s6  }
  0x1c   :  { %s1000_s15 = smov [#allocation8]  }
  0x1d   :  { %s48_s16 = sshll.u32 %s1000_s15, 4  ;;  %s49_s16 = int_to_ptr.vmem [resolvable:$true] %s48_s16 }
  0x1e   :  { %s958_s17 = scalar_lea.vmem %s49_s16, 512  ;;  %p963_p11 = scmp.lt.s32.totalorder %s49_s16, %s49_s16 }
  0x1f   :  { %p959_p10 = scmp.ne.s32.totalorder %s49_s16, %s958_s17  ;;  %p964_p12 = scmp.lt.s32.totalorder %s958_s17, %s958_s17 }
  0x21   :  { %p965_p13 = por %p964_p12, %p963_p11 }
  0x23   :  { %p966_p0 = pnand %p965_p13, %p959_p10 }
  0x25   :  { %969 = shalt.err (!%p966_p0)
}
  0x26   :  { %54 = dma.hbm_to_vmem [thread:$0]  %s1211_s3, 512, %s49_s16, [#allocation7], %s998_s8, %s998_s8, %s999_s6  }
  0x27   :  { %990 = dma.done.wait [#allocation4], 2048  }
  0x28   :  { %991 = vsyncadd [#allocation4], 4294965248 }
  0x29   :  { %992 = dma.done.wait [#allocation7], 768  }
  0x2a   :  { %993 = vsyncadd [#allocation7], 4294966528  ;;  %vm95_vm0 = vcmask 130048   ;;  %v87_v1 = vld [vmem:[#allocation6 + $0x8] sm:$0xff]  ;;  %v86_v2 = vld [vmem:[#allocation6] sm:$0xff]  ;;  %vm316_vm1 = vcmask 261120  }
  0x2b   :  { %v70_v3 = vld [vmem:[#allocation3] sm:$0xff]  ;;  %841 = vmatprep.subr.mxu0 %v87_v1  ;;  %v71_v4 = vld [vmem:[#allocation3 + $0x8] sm:$0xff]  ;;  %v72_v5 = vld [vmem:[#allocation3 + $0x10] sm:$0xff]  ;;  %vm650_vm2 = vcmask 130112   ;;  %vm657_vm3 = vcmask 195712   ;;  %vm664_vm4 = vcmask 261312  }
  0x2c   :  { %845 = vmatprep.mubr.msk.f32.mxu0 %vm95_vm0, %v70_v3  ;;  %842 = vmatpush3.msra.mxu0 %v87_v1  ;;  %v73_v6 = vld [vmem:[#allocation3 + $0x18] sm:$0xff]  ;;  %v74_v7 = vld [vmem:[#allocation3 + $0x20] sm:$0xff]  ;;  %v75_v8 = vld [vmem:[#allocation3 + $0x28] sm:$0xff]  ;;  %vm671_vm5 = vcmask 326912   ;;  %vm678_vm6 = vcmask 392512   ;;  %vm685_vm7 = vcmask 458112  }
  0x2d   :  { %843 = vmatprep.subr.mxu0 %v86_v2  ;;  %v76_v9 = vld [vmem:[#allocation3 + $0x30] sm:$0xff]  ;;  %v77_v10 = vld [vmem:[#allocation3 + $0x38] sm:$0xff]  ;;  %v78_v11 = vld [vmem:[#allocation3 + $0x40] sm:$0xff]  ;;  %vm692_vm8 = vcmask 523712   ;;  %vm699_vm9 = vcmask 589312   ;;  %vm706_vm10 = vcmask 654912  }
  0x2e   :  { %844 = vmatpush3.msra.mxu0 %v86_v2  ;;  %v79_v12 = vld [vmem:[#allocation3 + $0x48] sm:$0xff]  ;;  %v80_v13 = vld [vmem:[#allocation3 + $0x50] sm:$0xff]  ;;  %v81_v14 = vld [vmem:[#allocation3 + $0x58] sm:$0xff]  ;;  %vm713_vm11 = vcmask 720512   ;;  %vm720_vm12 = vcmask 786112   ;;  %vm727_vm13 = vcmask 851712  }
  0x2f   :  { %846 = vmatmul.mubr.msk.f32.vlgmr.msra.gmra.mxu0 %vm95_vm0, %v71_v4  ;;  %v82_v15 = vld [vmem:[#allocation3 + $0x60] sm:$0xff]  ;;  %v83_v16 = vld [vmem:[#allocation3 + $0x68] sm:$0xff]  ;;  %v84_v17 = vld [vmem:[#allocation3 + $0x70] sm:$0xff]  ;;  %vm734_vm14 = vcmask 917312   ;;  %vm741_vm15 = vcmask 982912  }
  0x30   :  { %848 = vmatprep.mubr.msk.f32.mxu0 %vm95_vm0, %v72_v5  ;;  %v85_v18 = vld [vmem:[#allocation3 + $0x78] sm:$0xff]  ;;  %v308_v19 = vld [vmem:[#allocation8 + $0x18] sm:$0xff]  ;;  %v307_v20 = vld [vmem:[#allocation8 + $0x10] sm:$0xff] }
  0x31   :  { %869 = vmatprep.subr.mxu1 %v308_v19  ;;  %v306_v21 = vld [vmem:[#allocation8 + $0x8] sm:$0xff]  ;;  %v305_v22 = vld [vmem:[#allocation8] sm:$0xff] }
  0x32   :  { %870 = vmatpush3.msra.mxu1 %v308_v19  ;;  %v768_v23 = vld [vmem:[%s1210_s2] ss:$0 sm:$0xff] }
  0x33   :  { %849 = vmatmul.mubr.msk.f32.gmra.mxu0 %vm95_vm0, %v73_v6  ;;  %871 = vmatprep.subr.mxu1 %v307_v20 }
  0x34   :  { %851 = vmatprep.mubr.msk.f32.mxu0 %vm95_vm0, %v74_v7  ;;  %872 = vmatpush3.msra.mxu1 %v307_v20 }
  0x35   :  { %873 = vmatprep.subr.mxu1 %v306_v21 }
  0x36   :  { %874 = vmatpush3.msra.mxu1 %v306_v21 }
  0x37   :  { %852 = vmatmul.mubr.msk.f32.gmra.mxu0 %vm95_vm0, %v75_v8  ;;  %875 = vmatprep.subr.mxu1 %v305_v22  ;;  %v1001_v8 = vmov 0  }
  0x38   :  { %854 = vmatprep.mubr.msk.f32.mxu0 %vm95_vm0, %v76_v9  ;;  %876 = vmatpush3.msra.mxu1 %v305_v22  ;;  %v1093_v9 = vld [vmem:[%s1212_s4] ss:$0 sm:$0xff]  ;;  %s1002_s4 = smov [#allocation9]  }
  0x39   :  { %908 = vset.pattern.permute.xlu1 %v1001_v8  ;;  %909 = vset.pattern.permute.xlu0 %v1001_v8 }
  0x3b   :  { %855 = vmatmul.mubr.msk.f32.gmra.mxu0 %vm95_vm0, %v77_v10 }
  0x3c   :  { %857 = vmatprep.mubr.msk.f32.mxu0 %vm95_vm0, %v78_v11 }
  0x3f   :  { %858 = vmatmul.mubr.msk.f32.gmra.mxu0 %vm95_vm0, %v79_v12 }
  0x40   :  { %860 = vmatprep.mubr.msk.f32.mxu0 %vm95_vm0, %v80_v13  ;;  %v1099_v13 = vld [vmem:[%s1213_s5] ss:$0 sm:$0xff]  ;;  %s758_s5 = sshll.u32 %s1002_s4, 4  ;;  %s759_s5 = int_to_ptr.vmem [resolvable:$true] %s758_s5 }
  0x41   :  { %s970_s22 = scalar_lea.vmem %s759_s5, 16  ;;  %s974_s23 = scalar_lea.vmem %s759_s5, 32 }
  0x42   :  { %p971_p1 = scmp.ne.s32.totalorder %s759_s5, %s970_s22  ;;  %p975_p2 = scmp.lt.s32.totalorder %s759_s5, %s759_s5 }
  0x43   :  { %861 = vmatmul.mubr.msk.f32.gmra.mxu0 %vm95_vm0, %v81_v14  ;;  %p976_p3 = scmp.lt.s32.totalorder %s974_s23, %s970_s22 }
  0x44   :  { %863 = vmatprep.mubr.msk.f32.mxu0 %vm95_vm0, %v82_v15 }
  0x45   :  { %p977_p4 = por %p976_p3, %p975_p2 }
  0x47   :  { %864 = vmatmul.mubr.msk.f32.gmra.mxu0 %vm95_vm0, %v83_v16  ;;  %p978_p5 = pnand %p977_p4, %p971_p1 }
  0x48   :  { %866 = vmatprep.mubr.msk.f32.mxu0 %vm95_vm0, %v84_v17 }
  0x4b   :  { %867 = vmatmul.mubr.msk.f32.gmra.mxu0 %vm95_vm0, %v85_v18  ;;  %vm748_vm0 = vcmask 1048512  }
  0xef   :  { %v847_v24 = vpop.f32.mrf.mxu0 }
  0xf0   :  { %v216_v25 = vadd.f32 %v847_v24, %v768_v23 }
  0xf1   :  { %v210_v26 = vpop.f32.mrf.mxu0 }
  0xf2   :  { %v211_v27 = vadd.f32 %v768_v23, %v210_v26  ;;  %v290_v30 = vmax.f32 %v216_v25, 0.0 }
  0xf3   :  { %v850_v28 = vpop.f32.mrf.mxu0 }
  0xf4   :  { %v289_v29 = vmax.f32 %v211_v27, 0.0  ;;  %v226_v31 = vadd.f32 %v850_v28, %v768_v23 }
  0xf5   :  { %v220_v32 = vpop.f32.mrf.mxu0 }
  0xf6   :  { %v221_v33 = vadd.f32 %v768_v23, %v220_v32  ;;  %877 = vmatprep.mubr.msk.f32.mxu1 %vm316_vm1, %v289_v29  ;;  %v292_v37 = vmax.f32 %v226_v31, 0.0 }
  0xf7   :  { %v853_v34 = vpop.f32.mrf.mxu0  ;;  %878 = vmatmul.mubr.msk.f32.vlgmr.msra.gmra.mxu1 %vm316_vm1, %v290_v30 }
  0xf8   :  { %v291_v35 = vmax.f32 %v221_v33, 0.0  ;;  %v236_v36 = vadd.f32 %v853_v34, %v768_v23 }
  0xf9   :  { %v230_v38 = vpop.f32.mrf.mxu0 }
  0xfa   :  { %v231_v39 = vadd.f32 %v768_v23, %v230_v38  ;;  %880 = vmatprep.mubr.msk.f32.mxu1 %vm316_vm1, %v291_v35  ;;  %v294_v40 = vmax.f32 %v236_v36, 0.0 }
  0xfb   :  { %881 = vmatmul.mubr.msk.f32.gmra.mxu1 %vm316_vm1, %v292_v37  ;;  %v856_v41 = vpop.f32.mrf.mxu0 }
  0xfc   :  { %v293_v42 = vmax.f32 %v231_v39, 0.0  ;;  %v246_v43 = vadd.f32 %v856_v41, %v768_v23 }
  0xfd   :  { %v240_v44 = vpop.f32.mrf.mxu0 }
  0xfe   :  { %883 = vmatprep.mubr.msk.f32.mxu1 %vm316_vm1, %v293_v42  ;;  %v241_v45 = vadd.f32 %v768_v23, %v240_v44  ;;  %v296_v46 = vmax.f32 %v246_v43, 0.0 }
  0xff   :  { %884 = vmatmul.mubr.msk.f32.gmra.mxu1 %vm316_vm1, %v294_v40  ;;  %v859_v47 = vpop.f32.mrf.mxu0 }
 0x100   :  { %v295_v48 = vmax.f32 %v241_v45, 0.0  ;;  %v256_v49 = vadd.f32 %v859_v47, %v768_v23 }
 0x101   :  { %v250_v50 = vpop.f32.mrf.mxu0 }
 0x102   :  { %886 = vmatprep.mubr.msk.f32.mxu1 %vm316_vm1, %v295_v48  ;;  %v251_v51 = vadd.f32 %v768_v23, %v250_v50  ;;  %v298_v52 = vmax.f32 %v256_v49, 0.0 }
 0x103   :  { %887 = vmatmul.mubr.msk.f32.gmra.mxu1 %vm316_vm1, %v296_v46  ;;  %v862_v53 = vpop.f32.mrf.mxu0 }
 0x104   :  { %v297_v54 = vmax.f32 %v251_v51, 0.0  ;;  %v266_v55 = vadd.f32 %v862_v53, %v768_v23 }
 0x105   :  { %v260_v56 = vpop.f32.mrf.mxu0 }
 0x106   :  { %889 = vmatprep.mubr.msk.f32.mxu1 %vm316_vm1, %v297_v54  ;;  %v261_v57 = vadd.f32 %v768_v23, %v260_v56  ;;  %v300_v58 = vmax.f32 %v266_v55, 0.0 }
 0x107   :  { %890 = vmatmul.mubr.msk.f32.gmra.mxu1 %vm316_vm1, %v298_v52  ;;  %v865_v59 = vpop.f32.mrf.mxu0 }
 0x108   :  { %v299_v60 = vmax.f32 %v261_v57, 0.0  ;;  %v276_v61 = vadd.f32 %v865_v59, %v768_v23 }
 0x109   :  { %v270_v62 = vpop.f32.mrf.mxu0 }
 0x10a   :  { %892 = vmatprep.mubr.msk.f32.mxu1 %vm316_vm1, %v299_v60  ;;  %v271_v63 = vadd.f32 %v768_v23, %v270_v62  ;;  %v302_v0 = vmax.f32 %v276_v61, 0.0 }
 0x10b   :  { %893 = vmatmul.mubr.msk.f32.gmra.mxu1 %vm316_vm1, %v300_v58  ;;  %v868_v1 = vpop.f32.mrf.mxu0 }
 0x10c   :  { %v301_v2 = vmax.f32 %v271_v63, 0.0  ;;  %v286_v3 = vadd.f32 %v868_v1, %v768_v23 }
 0x10d   :  { %v280_v4 = vpop.f32.mrf.mxu0 }
 0x10e   :  { %895 = vmatprep.mubr.msk.f32.mxu1 %vm316_vm1, %v301_v2  ;;  %v281_v5 = vadd.f32 %v768_v23, %v280_v4  ;;  %v304_v6 = vmax.f32 %v286_v3, 0.0 }
 0x10f   :  { %896 = vmatmul.mubr.msk.f32.gmra.mxu1 %vm316_vm1, %v302_v0 }
 0x110   :  { %v303_v7 = vmax.f32 %v281_v5, 0.0 }
 0x112   :  { %898 = vmatprep.mubr.msk.f32.mxu1 %vm316_vm1, %v303_v7 }
 0x113   :  { %899 = vmatmul.mubr.msk.f32.gmra.mxu1 %vm316_vm1, %v304_v6 }
 0x1b7   :  { %v879_v10 = vpop.f32.mrf.mxu1 }
 0x1b8   :  { %v437_v11 = vadd.f32 %v879_v10, %v1093_v9 }
 0x1b9   :  { %v431_v12 = vpop.f32.mrf.mxu1 }
 0x1ba   :  { %v511_v14 = vmax.f32 %v437_v11, 0.0  ;;  %v432_v15 = vadd.f32 %v1093_v9, %v431_v12 }
 0x1bb   :  { %v882_v16 = vpop.f32.mrf.mxu1 }
 0x1bc   :  { %v510_v17 = vmax.f32 %v432_v15, 0.0  ;;  %v447_v18 = vadd.f32 %v882_v16, %v1093_v9  ;;  %v534_v19 = vmul.f32 %v1099_v13, %v511_v14  ;;  %v597_v14 = vld [vmem:[#allocation2] sm:$0x1] }
 0x1bd   :  { %v441_v20 = vpop.f32.mrf.mxu1 }
 0x1be   :  { %v513_v21 = vmax.f32 %v447_v18, 0.0  ;;  %v442_v22 = vadd.f32 %v1093_v9, %v441_v20  ;;  %v552_v23 = vsel %vm316_vm1, %v534_v19, 0.0  ;;  %v533_v24 = vmul.f32 %v1099_v13, %v510_v17 }
 0x1bf   :  { %553 = vadd.xlane.f32.xlu0 %v552_v23  ;;  %v885_v25 = vpop.f32.mrf.mxu1 }
 0x1c0   :  { %v512_v26 = vmax.f32 %v442_v22, 0.0  ;;  %v457_v27 = vadd.f32 %v885_v25, %v1093_v9  ;;  %v536_v28 = vmul.f32 %v1099_v13, %v513_v21  ;;  %v549_v30 = vsel %vm316_vm1, %v533_v24, 0.0 }
 0x1c1   :  { %v451_v29 = vpop.f32.mrf.mxu1 }
 0x1c2   :  { %v515_v31 = vmax.f32 %v457_v27, 0.0  ;;  %v452_v32 = vadd.f32 %v1093_v9, %v451_v29  ;;  %v558_v33 = vsel %vm316_vm1, %v536_v28, 0.0  ;;  %v535_v34 = vmul.f32 %v1099_v13, %v512_v26 }
 0x1c3   :  { %559 = vadd.xlane.f32.xlu1 %v558_v33  ;;  %550 = vadd.xlane.f32.xlu0 %v549_v30  ;;  %v888_v35 = vpop.f32.mrf.mxu1 }
 0x1c4   :  { %v514_v36 = vmax.f32 %v452_v32, 0.0  ;;  %v467_v37 = vadd.f32 %v888_v35, %v1093_v9  ;;  %v538_v39 = vmul.f32 %v1099_v13, %v515_v31  ;;  %v555_v41 = vsel %vm316_vm1, %v535_v34, 0.0 }
 0x1c5   :  { %v461_v38 = vpop.f32.mrf.mxu1  ;;  %v603_v35 = vlaneseq }
 0x1c6   :  { %v517_v40 = vmax.f32 %v467_v37, 0.0  ;;  %v462_v42 = vadd.f32 %v1093_v9, %v461_v38  ;;  %v537_v43 = vmul.f32 %v1099_v13, %v514_v36  ;;  %v564_v49 = vsel %vm316_vm1, %v538_v39, 0.0 }
 0x1c7   :  { %556 = vadd.xlane.f32.xlu1 %v555_v41  ;;  %v891_v44 = vpop.f32.mrf.mxu1  ;;  %v1148_v38 = vshrl.u32 %v603_v35, 7  ;;  %v1151_v39 = vand.u32 127, %v603_v35 }
 0x1c8   :  { %v516_v45 = vmax.f32 %v462_v42, 0.0  ;;  %v561_v46 = vsel %vm316_vm1, %v537_v43, 0.0  ;;  %v477_v47 = vadd.f32 %v891_v44, %v1093_v9  ;;  %v540_v48 = vmul.f32 %v1099_v13, %v517_v40 }
 0x1c9   :  { %562 = vadd.xlane.f32.xlu0 %v561_v46  ;;  %v471_v50 = vpop.f32.mrf.mxu1  ;;  %v645_v43 = vadd.s32 4294967288, %v1151_v39  ;;  %v652_v44 = vadd.s32 4294967280, %v1151_v39  ;;  %v729_v35 = vadd.s32 4294967192, %v1151_v39 }
 0x1ca   :  { %v519_v51 = vmax.f32 %v477_v47, 0.0  ;;  %v570_v52 = vsel %vm316_vm1, %v540_v48, 0.0  ;;  %v472_v53 = vadd.f32 %v1093_v9, %v471_v50  ;;  %v539_v54 = vmul.f32 %v1099_v13, %v516_v45 }
 0x1cb   :  { %565 = vadd.xlane.f32.xlu1 %v564_v49  ;;  %v894_v55 = vpop.f32.mrf.mxu1  ;;  %v643_v48 = vsub.s32 %v1151_v39, %v1148_v38  ;;  %v648_v49 = vsub.s32 %v645_v43, %v1148_v38 }
 0x1cc   :  { %v487_v56 = vadd.f32 %v894_v55, %v1093_v9  ;;  %v518_v57 = vmax.f32 %v472_v53, 0.0  ;;  %v567_v59 = vsel %vm316_vm1, %v539_v54, 0.0  ;;  %v542_v62 = vmul.f32 %v1099_v13, %v519_v51 }
 0x1cd   :  { %571 = vadd.xlane.f32.xlu0 %v570_v52  ;;  %v481_v58 = vpop.f32.mrf.mxu1  ;;  %v655_v51 = vsub.s32 %v652_v44, %v1148_v38  ;;  %v659_v54 = vadd.s32 4294967272, %v1151_v39 }
 0x1ce   :  { %v521_v60 = vmax.f32 %v487_v56, 0.0  ;;  %v482_v61 = vadd.f32 %v1093_v9, %v481_v58  ;;  %v576_v3 = vsel %vm316_vm1, %v542_v62, 0.0  ;;  %v541_v5 = vmul.f32 %v1099_v13, %v518_v57 }
 0x1cf   :  { %v897_v63 = vpop.f32.mrf.mxu1  ;;  %v666_v57 = vadd.s32 4294967264, %v1151_v39 }
 0x1d0   :  { %v544_v0 = vmul.f32 %v1099_v13, %v521_v60  ;;  %v520_v2 = vmax.f32 %v482_v61, 0.0  ;;  %v497_v4 = vadd.f32 %v897_v63, %v1093_v9  ;;  %v573_v8 = vsel %vm316_vm1, %v541_v5, 0.0 }
 0x1d1   :  { %568 = vadd.xlane.f32.xlu0 %v567_v59  ;;  %v491_v1 = vpop.f32.mrf.mxu1  ;;  %v662_v60 = vsub.s32 %v659_v54, %v1148_v38  ;;  %v673_v61 = vadd.s32 4294967256, %v1151_v39 }
 0x1d2   :  { %v523_v7 = vmax.f32 %v497_v4, 0.0  ;;  %v492_v10 = vadd.f32 %v1093_v9, %v491_v1  ;;  %v543_v11 = vmul.f32 %v1099_v13, %v520_v2 }
 0x1d3   :  { %v900_v6 = vpop.f32.mrf.mxu1 }
 0x1d4   :  { %v522_v15 = vmax.f32 %v492_v10, 0.0  ;;  %v579_v16 = vsel %vm316_vm1, %v543_v11, 0.0  ;;  %v546_v18 = vmul.f32 %v1099_v13, %v523_v7  ;;  %v507_v19 = vadd.f32 %v900_v6, %v1093_v9 }
 0x1d5   :  { %577 = vadd.xlane.f32.xlu0 %v576_v3  ;;  %v501_v12 = vpop.f32.mrf.mxu1  ;;  %v680_v3 = vadd.s32 4294967248, %v1151_v39  ;;  %v676_v6 = vsub.s32 %v673_v61, %v1148_v38  ;;  %v687_v10 = vadd.s32 4294967240, %v1151_v39 }
 0x1d6   :  { %v502_v17 = vadd.f32 %v1093_v9, %v501_v12  ;;  %v588_v21 = vsel %vm316_vm1, %v546_v18, 0.0  ;;  %v545_v22 = vmul.f32 %v1099_v13, %v522_v15  ;;  %v525_v23 = vmax.f32 %v507_v19, 0.0 }
 0x1d7   :  { %v582_v9 = vsel %vm316_vm1, %v544_v0, 0.0  ;;  %v669_v0 = vsub.s32 %v666_v57, %v1148_v38 }
 0x1d8   :  { %v524_v20 = vmax.f32 %v502_v17, 0.0  ;;  %v585_v24 = vsel %vm316_vm1, %v545_v22, 0.0  ;;  %v548_v27 = vmul.f32 %v1099_v13, %v525_v23  ;;  %v701_v17 = vadd.s32 4294967224, %v1151_v39 }
 0x1d9   :  { %574 = vadd.xlane.f32.xlu0 %v573_v8  ;;  %v683_v8 = vsub.s32 %v680_v3, %v1148_v38 }
 0x1da   :  { %v547_v25 = vmul.f32 %v1099_v13, %v524_v20  ;;  %v594_v28 = vsel %vm316_vm1, %v548_v27, 0.0  ;;  %v605_v13 = vsub.s32 0, %v1148_v38  ;;  %v690_v20 = vsub.s32 %v687_v10, %v1148_v38 }
 0x1db   :  { %v704_v27 = vsub.s32 %v701_v17, %v1148_v38 }
 0x1dc   :  { %600 = vperm.xlu1 %908, %v597_v14   ;;  %v591_v26 = vsel %vm316_vm1, %v547_v25, 0.0  ;;  %v694_v14 = vadd.s32 4294967232, %v1151_v39 }
 0x1dd   :  { %580 = vadd.xlane.f32.xlu0 %v579_v16 }
 0x1de   :  { %v697_v22 = vsub.s32 %v694_v14, %v1148_v38 }
 0x1e1   :  { %589 = vadd.xlane.f32.xlu0 %v588_v21 }
 0x1e5   :  { %586 = vadd.xlane.f32.xlu0 %v585_v24  ;;  %v708_v24 = vadd.s32 4294967216, %v1151_v39 }
 0x1e9   :  { %592 = vadd.xlane.f32.xlu0 %v591_v26 }
 0x1ed   :  { %595 = vadd.xlane.f32.xlu0 %v594_v28 }
 0x200   :  { %583 = vadd.xlane.f32.xlu1 %v582_v9  ;;  %v715_v9 = vadd.s32 4294967208, %v1151_v39 }
 0x248   :  { %v554_v29 = vpop.xlane.xlu0 %553 }
 0x24c   :  { %v551_v30 = vpop.xlane.xlu0 %550  ;;  %v560_v31 = vpop.xlane.xlu1 %559 }
 0x250   :  { %v557_v33 = vpop.xlane.xlu1 %556 }
 0x252   :  { %v563_v32 = vpop.xlane.xlu0 %562 }
 0x254   :  { %v566_v36 = vpop.xlane.xlu1 %565 }
 0x256   :  { %v572_v34 = vpop.xlane.xlu0 %571 }
 0x258   :  { %v601_v40 = vpop.permute.xlu1 %600 }
 0x259   :  { %v1153_v42 = vrot.slane %v601_v40, %v605_v13  ;;  %v718_v13 = vsub.s32 %v715_v9, %v1148_v38 }
 0x25a   :  { %v569_v37 = vpop.xlane.xlu0 %568 }
 0x25b   :  { %v607_v46 = vadd.f32 %v1153_v42, %v551_v30  ;;  %v608_v47 = vadd.f32 %v1153_v42, %v554_v29  ;;  %v609_v50 = vadd.f32 %v1153_v42, %v557_v33  ;;  %v610_v58 = vadd.f32 %v1153_v42, %v560_v31 }
 0x25c   :  { %v611_v62 = vadd.f32 %v1153_v42, %v563_v32  ;;  %v612_v4 = vadd.f32 %v1153_v42, %v566_v36  ;;  %v613_v12 = vadd.f32 %v1153_v42, %v569_v37  ;;  %v614_v19 = vadd.f32 %v1153_v42, %v572_v34 }
 0x25d   :  { %v644_v52 = vrot.slane %v607_v46, %v643_v48  ;;  %v649_v53 = vrot.slane %v608_v47, %v648_v49  ;;  %v656_v56 = vrot.slane %v609_v50, %v655_v51  ;;  %v663_v2 = vrot.slane %v610_v58, %v662_v60 }
 0x25e   :  { %v578_v41 = vpop.xlane.xlu0 %577  ;;  %v670_v7 = vrot.slane %v611_v62, %v669_v0  ;;  %v677_v16 = vrot.slane %v612_v4, %v676_v6  ;;  %v684_v21 = vrot.slane %v613_v12, %v683_v8  ;;  %v691_v28 = vrot.slane %v614_v19, %v690_v20 }
 0x25f   :  { %v651_v59 = vsel %vm650_vm2, %v649_v53, %v644_v52  ;;  %v711_v30 = vsub.s32 %v708_v24, %v1148_v38  ;;  %v722_v32 = vadd.s32 4294967200, %v1151_v39  ;;  %v616_v33 = vadd.f32 %v1153_v42, %v578_v41 }
 0x260   :  { %v658_v63 = vsel %vm657_vm3, %v656_v56, %v651_v59  ;;  %v736_v36 = vadd.s32 4294967184, %v1151_v39  ;;  %v743_v37 = vadd.s32 4294967176, %v1151_v39  ;;  %v732_v48 = vsub.s32 %v729_v35, %v1148_v38 }
 0x261   :  { %v665_v5 = vsel %vm664_vm4, %v663_v2, %v658_v63  ;;  %v725_v44 = vsub.s32 %v722_v32, %v1148_v38  ;;  %v705_v47 = vrot.slane %v616_v33, %v704_v27 }
 0x262   :  { %v575_v45 = vpop.xlane.xlu0 %574  ;;  %v672_v11 = vsel %vm671_vm5, %v670_v7, %v665_v5  ;;  %v739_v39 = vsub.s32 %v736_v36, %v1148_v38  ;;  %v746_v52 = vsub.s32 %v743_v37, %v1148_v38 }
 0x263   :  { %v679_v18 = vsel %vm678_vm6, %v677_v16, %v672_v11  ;;  %v615_v23 = vadd.f32 %v1153_v42, %v575_v45 }
 0x264   :  { %v686_v25 = vsel %vm685_vm7, %v684_v21, %v679_v18 }
 0x265   :  { %v698_v29 = vrot.slane %v615_v23, %v697_v22  ;;  %v693_v34 = vsel %vm692_vm8, %v691_v28, %v686_v25 }
 0x266   :  { %v581_v55 = vpop.xlane.xlu0 %580 }
 0x267   :  { %v617_v31 = vadd.f32 %v1153_v42, %v581_v55  ;;  %v700_v40 = vsel %vm699_vm9, %v698_v29, %v693_v34 }
 0x268   :  { %v707_v53 = vsel %vm706_vm10, %v705_v47, %v700_v40 }
 0x269   :  { %v712_v43 = vrot.slane %v617_v31, %v711_v30 }
 0x26a   :  { %v590_v1 = vpop.xlane.xlu0 %589 }
 0x26b   :  { %v620_v49 = vadd.f32 %v1153_v42, %v590_v1  ;;  %v714_v56 = vsel %vm713_vm11, %v712_v43, %v707_v53 }
 0x26d   :  { %v733_v58 = vrot.slane %v620_v49, %v732_v48 }
 0x26e   :  { %v587_v15 = vpop.xlane.xlu0 %586 }
 0x26f   :  { %v619_v45 = vadd.f32 %v1153_v42, %v587_v15 }
 0x271   :  { %v726_v57 = vrot.slane %v619_v45, %v725_v44 }
 0x272   :  { %v593_v26 = vpop.xlane.xlu0 %592 }
 0x273   :  { %v621_v51 = vadd.f32 %v1153_v42, %v593_v26 }
 0x275   :  { %v740_v60 = vrot.slane %v621_v51, %v739_v39 }
 0x276   :  { %v596_v46 = vpop.xlane.xlu0 %595 }
 0x277   :  { %v622_v54 = vadd.f32 %v1153_v42, %v596_v46 }
 0x279   :  { %v747_v38 = vrot.slane %v622_v54, %v746_v52 }
 0x289   :  { %v584_v41 = vpop.xlane.xlu1 %583 }
 0x28a   :  { %v618_v50 = vadd.f32 %v1153_v42, %v584_v41 }
 0x28c   :  { %v719_v55 = vrot.slane %v618_v50, %v718_v13 }
 0x28e   :  { %v721_v59 = vsel %vm720_vm12, %v719_v55, %v714_v56 }
 0x28f   :  { %v728_v61 = vsel %vm727_vm13, %v726_v57, %v721_v59 }
 0x290   :  { %v735_v62 = vsel %vm734_vm14, %v733_v58, %v728_v61 }
 0x291   :  { %v742_v63 = vsel %vm741_vm15, %v740_v60, %v735_v62 }
 0x292   :  { %v749_v0 = vsel %vm748_vm0, %v747_v38, %v742_v63 }
 0x293   :  { %751 = vst [vmem:[#allocation9] sm:$0x1] %v749_v0 }
 0x294   :  { %981 = shalt.err (!%p978_p5)
}
 0x295   :  { %761 = dma.vmem_to_hbm [thread:$0]  %s759_s5, 16, %s1215_s7, [#allocation5]  }
 0x296   :  { %994 = dma.done.wait [#allocation5], 16  }
 0x297   :  { %995 = vsyncadd [#allocation5], 4294967280 }
 0x298   :  { %765 = vsyncpa [#allocation4], 1 }
 0x299   :  { %766 = vsyncpa [#allocation7], 1 }
 0x29a   :  { %767 = vsyncpa [#allocation5], 1 }

</bundles_post_ra>
